<compile_context>
chip_gen: v6e
topology: v6e:2x2x1
jax: 0.10.0
libtpu: 0.0.40
codegen_flags: <defaults>
</compile_context>

<pallas_src>
import jax
import jax.numpy as jnp
from jax.experimental import pallas as pl
from jax.experimental.pallas import tpu as pltpu

# ----------------------- small synthetic configuration -----------------------
B = 2               # batch size
C_IN = 3            # image channels (pixel_mean / pixel_std are 3-vectors)
H = W = 16          # image spatial size
HW = H * W
HIDDEN = 32         # cfg.MODEL.DETR.HIDDEN_DIM
NUM_QUERIES = 8     # cfg.MODEL.DETR.NUM_OBJECT_QUERIES
NUM_CLASSES = 4     # foreground classes; logits have NUM_CLASSES + 1 (no-object)
K1 = NUM_CLASSES + 1
BQ = B * NUM_QUERIES

# lane-dense 128-wide output-slab column layout
OUT_PAD = 128
COL_LOG = 0                 # [0 : K1)           class logits
COL_BOX = K1                # [K1 : K1+4)        pred boxes, cxcywh (sigmoid)
COL_XYXY = K1 + 4           # [K1+4 : K1+8)      boxes xyxy, scaled to image size
COL_BOX2 = K1 + 8           # [K1+8 : K1+12)     2nd cxcywh copy (scratch lanes:
                            #                    makes the roll direction-agnostic)
COL_SCORE = K1 + 12         # score (max foreground prob)
COL_LABEL = K1 + 13         # label (argmax) as float
N_USED = K1 + 14


# ------------------------------ fused kernel ---------------------------------
def _detr_fused_kernel(x_ref, w_ref, bp_ref, q_ref, wh_ref, bh_ref,
                       scale_ref, o_ref):
    # x_ref:     (B, C_IN, HW)      raw pixels (normalization folded into w_ref/bp_ref)
    # w_ref:     (C_IN, HIDDEN)     w_proj / pixel_std
    # bp_ref:    (1, HIDDEN)        (-pixel_mean/pixel_std) @ w_proj
    # q_ref:     (Q, HIDDEN)        object-query embeddings
    # wh_ref:    (HIDDEN, OUT_PAD)  [w_cls | w_box | w_box | w_box | 0] combined head
    # bh_ref:    (1, OUT_PAD)       matching biases
    # scale_ref: (B*Q, OUT_PAD)     [img_w, img_h, img_w, img_h] at xyxy lanes, 1 elsewhere
    # o_ref:     (B*Q, OUT_PAD)     lane-dense output slab

    # mean(W @ x) == W @ mean(x): pool the raw pixels over HW first (one lane
    # reduce), then one tiny matmul — no (HIDDEN, HW) feature map, no B-loop.
    pooled_pix = jnp.mean(x_ref[...], axis=-1)                         # (B, C_IN)
    pooled = jnp.dot(pooled_pix, w_ref[...],
                     preferred_element_type=jnp.float32)               # (B, HIDDEN)

    # queries + pooled context + folded projection bias, flattened to (B*Q, HIDDEN)
    qf = (q_ref[...][None, :, :] + pooled[:, None, :] + bp_ref[...][None, :, :]
          ).reshape(BQ, HIDDEN)

    # fused class + box (+duplicated box) heads: one MXU push, lane-dense (B*Q, 128)
    head = jnp.dot(qf, wh_ref[...],
                   preferred_element_type=jnp.float32) + bh_ref[...]

    lane = jax.lax.broadcasted_iota(jnp.int32, head.shape, 1)

    # Detr.inference(): softmax over the logit lanes, computed on the full
    # 128-lane vreg under a lane mask (no sub-vreg slices / relayouts).
    masked = jnp.where(lane < K1, head, jnp.float32(-1e30))
    m = jnp.max(masked, axis=-1, keepdims=True)
    e = jnp.exp(masked - m)                                            # 0 on masked lanes
    probs = e / jnp.sum(e, axis=-1, keepdims=True)

    # foreground max / argmax (drop the no-object class via the lane mask)
    fg = jnp.where(lane < NUM_CLASSES, probs, jnp.float32(-1.0))
    scores = jnp.max(fg, axis=-1, keepdims=True)                       # (B*Q, 1)
    labels = jnp.min(jnp.where(fg == scores, lane, NUM_CLASSES),
                     axis=-1, keepdims=True).astype(jnp.float32)       # (B*Q, 1)

    # sigmoid once on the full vreg: cxcywh at the BOX lanes and (via the
    # duplicated w_box columns) also at the XYXY and BOX2 lanes.
    sig = jax.nn.sigmoid(head)

    # box_cxcywh_to_xyxy fully in-lane: roll by 2 lanes so w/h lands under the
    # x1/y1 lanes and cx/cy under the x2/y2 lanes (cxcywh is replicated on both
    # sides of the xyxy lanes, so either rotate direction lands on the right
    # values), then one masked FMA and the full-width per-image scale multiply
    # (Boxes.scale).
    rolled = pltpu.roll(sig, shift=2, axis=1)
    lo = lane < (COL_XYXY + 2)                                         # x1/y1 lanes
    cxcy = jnp.where(lo, sig, rolled)
    wh = jnp.where(lo, rolled, sig)
    half = jnp.where(lo, jnp.float32(-0.5), jnp.float32(0.5))
    xyxy = (cxcy + half * wh) * scale_ref[...]                         # valid on xyxy lanes

    # assemble the slab with lane selects -> one unmasked 128-lane store
    out = jnp.where(lane < K1, head, jnp.float32(0.0))                 # logits, 0 pad
    out = jnp.where((lane >= COL_BOX) & (lane < COL_BOX + 4), sig, out)
    out = jnp.where((lane >= COL_XYXY) & (lane < COL_XYXY + 4), xyxy, out)
    out = jnp.where(lane == COL_SCORE, scores, out)
    out = jnp.where(lane == COL_LABEL, labels, out)
    o_ref[...] = out


# ------------------------------ host wrappers ---------------------------------
def init_params(key):
    ks = jax.random.split(key, 6)
    s = 0.02
    return {
        "w_proj": s * jax.random.normal(ks[0], (C_IN, HIDDEN), jnp.float32),
        "query":  s * jax.random.normal(ks[1], (NUM_QUERIES, HIDDEN), jnp.float32),
        "w_cls":  s * jax.random.normal(ks[2], (HIDDEN, K1), jnp.float32),
        "b_cls":  s * jax.random.normal(ks[3], (1, K1), jnp.float32),
        "w_box":  s * jax.random.normal(ks[4], (HIDDEN, 4), jnp.float32),
        "b_box":  s * jax.random.normal(ks[5], (1, 4), jnp.float32),
    }


def prepare_fused_params(params, pixel_mean, pixel_std):
    """One-time (hoisted out of the per-frame path): fold pixel normalization into
    the projection, pack the class/box heads into one lane-dense (HIDDEN, 128)
    weight with the box columns duplicated at the xyxy and scratch lanes so the
    in-kernel cxcywh->xyxy assembly is pure lane work."""
    inv_std = (1.0 / pixel_std).astype(jnp.float32)                    # (C_IN,)
    w_eff = (params["w_proj"] * inv_std[:, None]).astype(jnp.float32)  # (C_IN, HIDDEN)
    b_proj = jnp.dot(-pixel_mean * inv_std,
                     params["w_proj"]).reshape(1, HIDDEN).astype(jnp.float32)

    w_head = jnp.zeros((HIDDEN, OUT_PAD), jnp.float32)
    b_head = jnp.zeros((1, OUT_PAD), jnp.float32)
    w_head = w_head.at[:, COL_LOG:COL_LOG + K1].set(params["w_cls"])
    b_head = b_head.at[:, COL_LOG:COL_LOG + K1].set(params["b_cls"])
    for col in (COL_BOX, COL_XYXY, COL_BOX2):
        w_head = w_head.at[:, col:col + 4].set(params["w_box"])
        b_head = b_head.at[:, col:col + 4].set(params["b_box"])

    return {
        "w_proj_eff": w_eff,                                           # (C_IN, HIDDEN)
        "b_proj": b_proj,                                              # (1, HIDDEN)
        "query": params["query"].astype(jnp.float32),                  # (Q, HIDDEN)
        "w_head": w_head,                                              # (HIDDEN, 128)
        "b_head": b_head,                                              # (1, 128)
    }


def make_scale_slab(image_sizes):
    """One-time: per-query 128-lane scale slab — [img_w, img_h, img_w, img_h] at
    the xyxy lanes, 1.0 elsewhere — so Boxes.scale is a single full-vreg multiply."""
    sizes = jnp.asarray(image_sizes, jnp.float32)                      # (B, 2) = (h, w)
    whwh = jnp.stack([sizes[:, 1], sizes[:, 0], sizes[:, 1], sizes[:, 0]], axis=-1)
    slab = jnp.ones((B, NUM_QUERIES, OUT_PAD), jnp.float32)
    slab = slab.at[:, :, COL_XYXY:COL_XYXY + 4].set(whwh[:, None, :])
    return slab.reshape(BQ, OUT_PAD)


@jax.jit
def detr_forward(images_nchw, fused, scale_slab):
    b, c, h, w = images_nchw.shape
    x3d = images_nchw.reshape(b, c, h * w).astype(jnp.float32)         # reshape only

    slab = pl.pallas_call(
        _detr_fused_kernel,
        out_shape=jax.ShapeDtypeStruct((BQ, OUT_PAD), jnp.float32),
        in_specs=[pl.BlockSpec(memory_space=pltpu.MemorySpace.VMEM)] * 7,
        out_specs=pl.BlockSpec(memory_space=pltpu.MemorySpace.VMEM),
        cost_estimate=pl.CostEstimate(
            flops=2 * (B * C_IN * HW + B * C_IN * HIDDEN + BQ * HIDDEN * OUT_PAD),
            transcendentals=2 * BQ * OUT_PAD,
            bytes_accessed=4 * (B * C_IN * HW + C_IN * HIDDEN + HIDDEN
                                + NUM_QUERIES * HIDDEN + (HIDDEN + 1) * OUT_PAD
                                + 2 * BQ * OUT_PAD)),
    )(x3d, fused["w_proj_eff"], fused["b_proj"], fused["query"],
      fused["w_head"], fused["b_head"], scale_slab)

    o3 = slab.reshape(b, NUM_QUERIES, OUT_PAD)
    return {
        "pred_logits": o3[..., COL_LOG:COL_LOG + K1],
        "pred_boxes": o3[..., COL_BOX:COL_BOX + 4],
        "pred_boxes_xyxy": o3[..., COL_XYXY:COL_XYXY + 4],
        "scores": o3[..., COL_SCORE],
        "pred_classes": o3[..., COL_LABEL].astype(jnp.int32),
    }


# ------------------------------ plain-JAX reference ----------------------------
def detr_reference(images, params, pixel_mean, pixel_std, image_sizes):
    x = (images - pixel_mean[None, :, None, None]) / pixel_std[None, :, None, None]
    tokens = x.reshape(B, C_IN, HW).transpose(0, 2, 1)                 # (B, HW, C)
    feat = tokens @ params["w_proj"]                                   # (B, HW, HIDDEN)
    pooled = feat.mean(axis=1, keepdims=True)                          # (B, 1, HIDDEN)
    qf = params["query"][None] + pooled                                # (B, Q, HIDDEN)
    logits = qf @ params["w_cls"] + params["b_cls"]
    boxes = jax.nn.sigmoid(qf @ params["w_box"] + params["b_box"])
    probs = jax.nn.softmax(logits, axis=-1)[..., :NUM_CLASSES]
    scores = probs.max(-1)
    labels = jnp.argmax(probs, axis=-1)
    cxcy, wh_ = boxes[..., :2], boxes[..., 2:]
    xyxy = jnp.concatenate([cxcy - 0.5 * wh_, cxcy + 0.5 * wh_], -1)
    scale = jnp.asarray([[[float(sz[1]), float(sz[0]), float(sz[1]), float(sz[0])]]
                         for sz in image_sizes], jnp.float32)
    return logits, boxes, scores, labels, xyxy * scale


if __name__ == "__main__":
    key = jax.random.PRNGKey(0)
    k_img, k_par = jax.random.split(key)

    # (B, C, H, W) images in [0, 255], PyTorch NCHW layout
    images = jax.random.uniform(k_img, (B, C_IN, H, W), jnp.float32) * 255.0
    image_sizes = [(H, W)] * B

    pixel_mean = jnp.asarray([123.675, 116.280, 103.530], jnp.float32)
    pixel_std = jnp.asarray([58.395, 57.120, 57.375], jnp.float32)

    params = init_params(k_par)

    # one-time setup, hoisted out of the per-frame path
    fused = prepare_fused_params(params, pixel_mean, pixel_std)
    scale_slab = make_scale_slab(image_sizes)
    jax.block_until_ready((fused, scale_slab))

    out = detr_forward(images, fused, scale_slab)
    jax.block_until_ready(out)

    # shape/dtype sanity checks
    assert out["pred_logits"].shape == (B, NUM_QUERIES, K1)
    assert out["pred_boxes"].shape == (B, NUM_QUERIES, 4)
    assert out["scores"].shape == (B, NUM_QUERIES)
    assert out["pred_classes"].shape == (B, NUM_QUERIES)
    assert out["pred_classes"].dtype == jnp.int32
    assert out["pred_boxes_xyxy"].shape == (B, NUM_QUERIES, 4)

    # numerical check against a pure-JAX reference
    ref_logits, ref_boxes, ref_scores, ref_labels, ref_xyxy = detr_reference(
        images, params, pixel_mean, pixel_std, image_sizes)
    assert jnp.allclose(out["pred_logits"], ref_logits, rtol=1e-3, atol=1e-3)
    assert jnp.allclose(out["pred_boxes"], ref_boxes, rtol=1e-3, atol=1e-3)
    assert jnp.allclose(out["scores"], ref_scores, rtol=1e-3, atol=1e-3)
    assert jnp.all(out["pred_classes"] == ref_labels)
    assert jnp.allclose(out["pred_boxes_xyxy"], ref_xyxy, rtol=1e-3, atol=1e-3)

    print("KERNEL_OK")
</pallas_src>

<mosaic_0001>
module attributes {stable_mosaic.version = 11 : i64} {
  func.func @_detr_fused_kernel(%arg0: memref<2x3x256xf32, #tpu.memory_space<vmem>>, %arg1: memref<3x32xf32, #tpu.memory_space<vmem>>, %arg2: memref<1x32xf32, #tpu.memory_space<vmem>>, %arg3: memref<8x32xf32, #tpu.memory_space<vmem>>, %arg4: memref<32x128xf32, #tpu.memory_space<vmem>>, %arg5: memref<1x128xf32, #tpu.memory_space<vmem>>, %arg6: memref<16x128xf32, #tpu.memory_space<vmem>>, %arg7: memref<16x128xf32, #tpu.memory_space<vmem>>) attributes {dimension_semantics = [], scalar_prefetch = 0 : i64, scratch_operands = 0 : i64, tpu.core_type = #tpu.core_type<tc>} {
    %c0 = arith.constant 0 : index
    %c0_0 = arith.constant 0 : index
    %c0_1 = arith.constant 0 : index
    %0 = vector.load %arg0[%c0, %c0_0, %c0_1] : memref<2x3x256xf32, #tpu.memory_space<vmem>>, vector<2x3x256xf32>
    %cst = arith.constant dense<0.000000e+00> : vector<2x3xf32>
    %1 = vector.multi_reduction <add>, %0, %cst [2] : vector<2x3x256xf32> to vector<2x3xf32>
    %cst_2 = arith.constant 2.560000e+02 : f32
    %2 = vector.broadcast %cst_2 : f32 to vector<2x3xf32>
    %3 = arith.divf %1, %2 : vector<2x3xf32>
    %c0_3 = arith.constant 0 : index
    %c0_4 = arith.constant 0 : index
    %4 = vector.load %arg1[%c0_3, %c0_4] : memref<3x32xf32, #tpu.memory_space<vmem>>, vector<3x32xf32>
    %cst_5 = arith.constant dense<0.000000e+00> : vector<2x32xf32>
    %5 = tpu.matmul %3, %4, %cst_5 {dimension_numbers = #tpu.dot_dimension_numbers<[1], [0], [0], [1], [0, 0, 1, 1], [], []>} : vector<2x3xf32>, vector<3x32xf32>, vector<2x32xf32> -> vector<2x32xf32>
    %c0_6 = arith.constant 0 : index
    %c0_7 = arith.constant 0 : index
    %6 = vector.load %arg3[%c0_6, %c0_7] : memref<8x32xf32, #tpu.memory_space<vmem>>, vector<8x32xf32>
    %7 = vector.shape_cast %6 : vector<8x32xf32> to vector<1x8x32xf32>
    %8 = vector.shape_cast %5 : vector<2x32xf32> to vector<2x1x32xf32>
    %9 = vector.broadcast %7 : vector<1x8x32xf32> to vector<2x8x32xf32>
    %10 = vector.broadcast %8 : vector<2x1x32xf32> to vector<2x8x32xf32>
    %11 = arith.addf %9, %10 : vector<2x8x32xf32>
    %c0_8 = arith.constant 0 : index
    %c0_9 = arith.constant 0 : index
    %12 = vector.load %arg2[%c0_8, %c0_9] : memref<1x32xf32, #tpu.memory_space<vmem>>, vector<1x32xf32>
    %13 = vector.shape_cast %12 : vector<1x32xf32> to vector<1x1x32xf32>
    %14 = vector.broadcast %13 : vector<1x1x32xf32> to vector<2x8x32xf32>
    %15 = arith.addf %11, %14 : vector<2x8x32xf32>
    %16 = vector.shape_cast %15 : vector<2x8x32xf32> to vector<16x32xf32>
    %c0_10 = arith.constant 0 : index
    %c0_11 = arith.constant 0 : index
    %17 = vector.load %arg4[%c0_10, %c0_11] : memref<32x128xf32, #tpu.memory_space<vmem>>, vector<32x128xf32>
    %cst_12 = arith.constant dense<0.000000e+00> : vector<16x128xf32>
    %18 = tpu.matmul %16, %17, %cst_12 {dimension_numbers = #tpu.dot_dimension_numbers<[1], [0], [0], [1], [0, 0, 1, 1], [], []>} : vector<16x32xf32>, vector<32x128xf32>, vector<16x128xf32> -> vector<16x128xf32>
    %c0_13 = arith.constant 0 : index
    %c0_14 = arith.constant 0 : index
    %19 = vector.load %arg5[%c0_13, %c0_14] : memref<1x128xf32, #tpu.memory_space<vmem>>, vector<1x128xf32>
    %20 = vector.broadcast %19 : vector<1x128xf32> to vector<16x128xf32>
    %21 = arith.addf %18, %20 : vector<16x128xf32>
    %22 = tpu.iota {dimensions = array<i32: 1>} : vector<16x128xi32>
    %c5_i32 = arith.constant 5 : i32
    %23 = vector.broadcast %c5_i32 : i32 to vector<16x128xi32>
    %24 = arith.cmpi slt, %22, %23 : vector<16x128xi32>
    %cst_15 = arith.constant -1.000000e+30 : f32
    %25 = vector.broadcast %cst_15 : f32 to vector<16x128xf32>
    %26 = arith.select %24, %21, %25 : vector<16x128xi1>, vector<16x128xf32>
    %cst_16 = arith.constant dense<0xFF800000> : vector<16xf32>
    %27 = vector.multi_reduction <maximumf>, %26, %cst_16 [1] : vector<16x128xf32> to vector<16xf32>
    %28 = vector.shape_cast %27 : vector<16xf32> to vector<16x1xf32>
    %29 = vector.broadcast %28 : vector<16x1xf32> to vector<16x128xf32>
    %30 = arith.subf %26, %29 : vector<16x128xf32>
    %31 = math.exp %30 : vector<16x128xf32>
    %cst_17 = arith.constant dense<0.000000e+00> : vector<16xf32>
    %32 = vector.multi_reduction <add>, %31, %cst_17 [1] : vector<16x128xf32> to vector<16xf32>
    %33 = vector.shape_cast %32 : vector<16xf32> to vector<16x1xf32>
    %34 = vector.broadcast %33 : vector<16x1xf32> to vector<16x128xf32>
    %35 = arith.divf %31, %34 : vector<16x128xf32>
    %c4_i32 = arith.constant 4 : i32
    %36 = vector.broadcast %c4_i32 : i32 to vector<16x128xi32>
    %37 = arith.cmpi slt, %22, %36 : vector<16x128xi32>
    %cst_18 = arith.constant -1.000000e+00 : f32
    %38 = vector.broadcast %cst_18 : f32 to vector<16x128xf32>
    %39 = arith.select %37, %35, %38 : vector<16x128xi1>, vector<16x128xf32>
    %cst_19 = arith.constant dense<0xFF800000> : vector<16xf32>
    %40 = vector.multi_reduction <maximumf>, %39, %cst_19 [1] : vector<16x128xf32> to vector<16xf32>
    %41 = vector.shape_cast %40 : vector<16xf32> to vector<16x1xf32>
    %42 = vector.broadcast %41 : vector<16x1xf32> to vector<16x128xf32>
    %43 = arith.cmpf oeq, %39, %42 : vector<16x128xf32>
    %c4_i32_20 = arith.constant 4 : i32
    %44 = vector.broadcast %c4_i32_20 : i32 to vector<16x128xi32>
    %45 = arith.select %43, %22, %44 : vector<16x128xi1>, vector<16x128xi32>
    %cst_21 = arith.constant dense<2147483647> : vector<16xi32>
    %46 = vector.multi_reduction <minsi>, %45, %cst_21 [1] : vector<16x128xi32> to vector<16xi32>
    %47 = vector.shape_cast %46 : vector<16xi32> to vector<16x1xi32>
    %48 = arith.sitofp %47 : vector<16x1xi32> to vector<16x1xf32>
    %49 = arith.negf %21 : vector<16x128xf32>
    %50 = math.exp %49 : vector<16x128xf32>
    %cst_22 = arith.constant 1.000000e+00 : f32
    %51 = vector.broadcast %cst_22 : f32 to vector<16x128xf32>
    %52 = arith.addf %51, %50 : vector<16x128xf32>
    %53 = arith.divf %51, %52 : vector<16x128xf32>
    %c2_i32 = arith.constant 2 : i32
    %54 = tpu.dynamic_rotate %53 by %c2_i32 dim 1 : vector<16x128xf32>, i32 -> vector<16x128xf32>
    %c11_i32 = arith.constant 11 : i32
    %55 = vector.broadcast %c11_i32 : i32 to vector<16x128xi32>
    %56 = arith.cmpi slt, %22, %55 : vector<16x128xi32>
    %57 = arith.select %56, %53, %54 : vector<16x128xi1>, vector<16x128xf32>
    %58 = arith.select %56, %54, %53 : vector<16x128xi1>, vector<16x128xf32>
    %cst_23 = arith.constant -5.000000e-01 : f32
    %cst_24 = arith.constant 5.000000e-01 : f32
    %59 = vector.broadcast %cst_23 : f32 to vector<16x128xf32>
    %60 = vector.broadcast %cst_24 : f32 to vector<16x128xf32>
    %61 = arith.select %56, %59, %60 : vector<16x128xi1>, vector<16x128xf32>
    %62 = arith.mulf %61, %58 : vector<16x128xf32>
    %63 = arith.addf %57, %62 : vector<16x128xf32>
    %c0_25 = arith.constant 0 : index
    %c0_26 = arith.constant 0 : index
    %64 = vector.load %arg6[%c0_25, %c0_26] : memref<16x128xf32, #tpu.memory_space<vmem>>, vector<16x128xf32>
    %65 = arith.mulf %63, %64 : vector<16x128xf32>
    %c5_i32_27 = arith.constant 5 : i32
    %66 = vector.broadcast %c5_i32_27 : i32 to vector<16x128xi32>
    %67 = arith.cmpi slt, %22, %66 : vector<16x128xi32>
    %cst_28 = arith.constant 0.000000e+00 : f32
    %68 = vector.broadcast %cst_28 : f32 to vector<16x128xf32>
    %69 = arith.select %67, %21, %68 : vector<16x128xi1>, vector<16x128xf32>
    %c5_i32_29 = arith.constant 5 : i32
    %70 = vector.broadcast %c5_i32_29 : i32 to vector<16x128xi32>
    %71 = arith.cmpi sge, %22, %70 : vector<16x128xi32>
    %c9_i32 = arith.constant 9 : i32
    %72 = vector.broadcast %c9_i32 : i32 to vector<16x128xi32>
    %73 = arith.cmpi slt, %22, %72 : vector<16x128xi32>
    %74 = arith.andi %71, %73 : vector<16x128xi1>
    %75 = arith.select %74, %53, %69 : vector<16x128xi1>, vector<16x128xf32>
    %c9_i32_30 = arith.constant 9 : i32
    %76 = vector.broadcast %c9_i32_30 : i32 to vector<16x128xi32>
    %77 = arith.cmpi sge, %22, %76 : vector<16x128xi32>
    %c13_i32 = arith.constant 13 : i32
    %78 = vector.broadcast %c13_i32 : i32 to vector<16x128xi32>
    %79 = arith.cmpi slt, %22, %78 : vector<16x128xi32>
    %80 = arith.andi %77, %79 : vector<16x128xi1>
    %81 = arith.select %80, %65, %75 : vector<16x128xi1>, vector<16x128xf32>
    %c17_i32 = arith.constant 17 : i32
    %82 = vector.broadcast %c17_i32 : i32 to vector<16x128xi32>
    %83 = arith.cmpi eq, %22, %82 : vector<16x128xi32>
    %84 = vector.shape_cast %41 : vector<16x1xf32> to vector<16x1xf32>
    %85 = vector.broadcast %84 : vector<16x1xf32> to vector<16x128xf32>
    %86 = arith.select %83, %85, %81 : vector<16x128xi1>, vector<16x128xf32>
    %c18_i32 = arith.constant 18 : i32
    %87 = vector.broadcast %c18_i32 : i32 to vector<16x128xi32>
    %88 = arith.cmpi eq, %22, %87 : vector<16x128xi32>
    %89 = vector.shape_cast %48 : vector<16x1xf32> to vector<16x1xf32>
    %90 = vector.broadcast %89 : vector<16x1xf32> to vector<16x128xf32>
    %91 = arith.select %88, %90, %86 : vector<16x128xi1>, vector<16x128xf32>
    %c0_31 = arith.constant 0 : index
    %c0_32 = arith.constant 0 : index
    %92 = vector.load %arg7[%c0_31, %c0_32] : memref<16x128xf32, #tpu.memory_space<vmem>>, vector<16x128xf32>
    tpu.vector_store %arg7[%c0_31, %c0_32], %91 {strides = array<i32>} : memref<16x128xf32, #tpu.memory_space<vmem>>, vector<16x128xf32>,
    return
  }
}

</mosaic_0001>

<bundles_post_ra>
// kernel: detr_forward.1
= control target key start
LH: loop header
LB: loop body
LE: loop exit
PB: predicated region body
PF: predicated region fallthrough
CT: control target
= control target key end

     0   :  { %vm34_vm0 = vcmask 1042432   ;;  %v448_v10 = vmov 0.0   ;;  %vm449_vm1 = vmmov 0   ;;  %v51_v12 = vlaneseq  ;;  %s602_s0 = inlined_call_operand.vmem [shape: f32[2,3,256], index: 0, kind: input, shape index: {}]   ;;  %s603_s1 = inlined_call_operand.vmem [shape: f32[3,32], index: 1, kind: input, shape index: {}]   ;;  %s604_s4 = inlined_call_operand.vmem [shape: f32[32,128], index: 4, kind: input, shape index: {}]   ;;  %s605_s3 = inlined_call_operand.vmem [shape: f32[8,32], index: 3, kind: input, shape index: {}]   ;;  %s606_s2 = inlined_call_operand.vmem [shape: f32[1,32], index: 2, kind: input, shape index: {}]   ;;  %s607_s5 = inlined_call_operand.vmem [shape: f32[1,128], index: 5, kind: input, shape index: {}]   ;;  %s608_s6 = inlined_call_operand.vmem [shape: f32[16,128], index: 6, kind: input, shape index: {}]   ;;  %s609_s7 = inlined_call_operand.vmem [shape: f32[16,128], index: 7, kind: output, shape index: {}]  }
   0x1   :  { %v26_v0 = vld [vmem:[%s602_s0] sm:$0x77]  ;;  %v27_v1 = vld [vmem:[%s602_s0 + $0x8] sm:$0x77]  ;;  %409 = vmatprep.subr.mxu0 %v448_v10  ;;  %411 = vmatprep.mubr.msk.f32.mxu0 %vm449_vm1, %v448_v10  ;;  %vm61_vm2 = vcmask 1041409   ;;  %vm63_vm3 = vcmask 23552  }
   0x2   :  { %v30_v2 = vcombine.high %v26_v0, %v26_v0  ;;  %v35_v3 = vsel %vm34_vm0, %v26_v0, 0.0  ;;  %v31_v4 = vcombine.high %v27_v1, %v27_v1  ;;  %v40_v6 = vsel %vm34_vm0, %v27_v1, 0.0  ;;  %v48_v11 = vld [vmem:[%s603_s1] sm:$0x7]  ;;  %v187_v23 = vld [vmem:[%s604_s4 + $0x18] sm:$0xff]  ;;  %v186_v24 = vld [vmem:[%s604_s4 + $0x10] sm:$0xff] }
   0x3   :  { %410 = vmatpush3.msk.msra.mxu0 %vm34_vm0, %v48_v11  ;;  %v507_v13 = vand.u32 127, %v51_v12  ;;  %v54_v14 = vshrl.u32 %v51_v12, 7  ;;  %414 = vmatprep.subr.mxu1 %v187_v23  ;;  %v185_v25 = vld [vmem:[%s604_s4 + $0x8] sm:$0xff]  ;;  %v184_v26 = vld [vmem:[%s604_s4] sm:$0xff]  ;;  %v450_v27 = vmov 1966171168  }
   0x4   :  { %v36_v5 = vsel %vm34_vm0, %v30_v2, 0.0  ;;  %v41_v7 = vsel %vm34_vm0, %v31_v4, 0.0  ;;  %415 = vmatpush3.msra.mxu1 %v187_v23  ;;  %v142_v28 = vunpack.c.l.s4 %v450_v27  ;;  %v139_v37 = vld [vmem:[%s605_s3] sm:$0xff]  ;;  %vm195_vm4 = vcmask 261120  }
   0x5   :  { %v37_v8 = vadd.f32 %v36_v5, %v35_v3  ;;  %v42_v9 = vadd.f32 %v41_v7, %v40_v6  ;;  %v55_v16 = vsub.s32 %v507_v13, %v54_v14  ;;  %416 = vmatprep.subr.mxu1 %v186_v24  ;;  %v165_v33 = vsub.s32 0, %v54_v14  ;;  %v395_v40 = vld [vmem:[%s606_s2] ss:$0 sm:$0xff]  ;;  %s451_s2 = smov 2  }
   0x6   :  { %417 = vmatpush3.msra.mxu1 %v186_v24  ;;  %v143_v29 = vunpack.c.0.s8 %v142_v28  ;;  %v396_v46 = vld [vmem:[%s607_s5] ss:$0 sm:$0xff]  ;;  %vm277_vm5 = vcmp.lt.s32.totalorder %v507_v13, 5  ;;  %vm298_vm6 = vcmp.lt.s32.totalorder %v507_v13, 4  ;;  %vm355_vm11 = vcmp.lt.s32.totalorder %v507_v13, 11 }
   0x7   :  { %38 = vadd.xlane.f32.xlu0 %v37_v8  ;;  %418 = vmatprep.subr.mxu1 %v185_v25  ;;  %vm376_vm12 = vcmp.ge.s32.totalorder %v507_v13, 9  ;;  %vm377_vm13 = vcmp.lt.s32.totalorder %v507_v13, 13  ;;  %vm371_vm14 = vcmp.ge.s32.totalorder %v507_v13, 5  ;;  %vm372_vm15 = vcmp.lt.s32.totalorder %v507_v13, 9 }
   0x8   :  { %419 = vmatpush3.msra.mxu1 %v185_v25  ;;  %v146_v30 = vsub.s32 %v143_v29, %v54_v14  ;;  %vm559_vm0 = vmand %vm376_vm12, %vm377_vm13 }
   0x9   :  { %420 = vmatprep.subr.mxu1 %v184_v26  ;;  %vm565_vm1 = vmand %vm371_vm14, %vm372_vm15 }
   0xa   :  { %421 = vmatpush3.msra.mxu1 %v184_v26 }
   0xb   :  { %43 = vadd.xlane.f32.xlu0 %v42_v9 }
  0x90   :  { %v39_v15 = vpop.xlane.xlu0 %38 }
  0x91   :  { %v46_v17 = vmul.f32 0.00390625, %v39_v15 }
  0x93   :  { %v56_v20 = vrot.slane %v46_v17, %v55_v16 }
  0x94   :  { %v44_v18 = vpop.xlane.xlu0 %43 }
  0x95   :  { %v47_v19 = vmul.f32 0.00390625, %v44_v18 }
  0x97   :  { %v60_v21 = vrot.slane %v47_v19, %v55_v16 }
  0x99   :  { %v62_v22 = vsel %vm61_vm2, %v60_v21, %v56_v20  ;;  %vm381_vm2 = vcmp.eq.s32.totalorder %v507_v13, 17 }
  0x9a   :  { %412 = vmatmul.mubr.msk.f32.vlgmr.msra.gmra.mxu0 %vm63_vm3, %v62_v22  ;;  %vm384_vm3 = vcmp.eq.s32.totalorder %v507_v13, 18 }
 0x15a   :  { %v135_v31 = vpop.f32.mrf.mxu0 }
 0x15b   :  { %v147_v32 = vrot.slane %v135_v31, %v146_v30 }
 0x15c   :  { %v413_v34 = vpop.f32.mrf.mxu0 }
 0x15d   :  { %v148_v35 = vcombine.high %v147_v32, %v147_v32  ;;  %v155_v36 = vrot.slane %v147_v32, %v146_v30  ;;  %v452_v34 = vmov 0.5  }
 0x15f   :  { %v162_v38 = vrot.slane %v148_v35, %v146_v30  ;;  %v166_v39 = vrot.slane %v155_v36, %v165_v33  ;;  %v360_v35 = vsel %vm355_vm11, -0.5, %v452_v34 }
 0x161   :  { %v170_v41 = vrot.slane %v162_v38, %v165_v33  ;;  %v173_v42 = vadd.f32 %v166_v39, %v139_v37 }
 0x163   :  { %v174_v43 = vadd.f32 %v170_v41, %v139_v37  ;;  %v182_v44 = vadd.f32 %v395_v40, %v173_v42 }
 0x165   :  { %v183_v45 = vadd.f32 %v395_v40, %v174_v43  ;;  %422 = vmatprep.mubr.msk.f32.mxu1 %vm195_vm4, %v182_v44  ;;  %v365_v43 = vld [vmem:[%s608_s6] sm:$0xff] }
 0x167   :  { %423 = vmatmul.mubr.msk.f32.vlgmr.msra.gmra.mxu1 %vm195_vm4, %v183_v45 }
 0x227   :  { %v424_v47 = vpop.f32.mrf.mxu1 }
 0x228   :  { %v274_v48 = vadd.f32 %v424_v47, %v396_v46 }
 0x229   :  { %v268_v49 = vpop.f32.mrf.mxu1 }
 0x22a   :  { %v269_v50 = vadd.f32 %v396_v46, %v268_v49  ;;  %v532_v51 = vsel %vm277_vm5, %v274_v48, 0.0  ;;  %v279_v54 = vsel %vm277_vm5, %v274_v48, -1e+30  ;;  %v400_v16 = vmul.f32 -1.442695, %v274_v48 }
 0x22c   :  { %v278_v52 = vsel %vm277_vm5, %v269_v50, -1e+30  ;;  %v534_v53 = vsel %vm277_vm5, %v269_v50, 0.0  ;;  %v399_v17 = vmul.f32 -1.442695, %v269_v50 }
 0x22d   :  { %280 = vmax.xlane.f32.xlu1 %v278_v52 }
 0x231   :  { %282 = vmax.xlane.f32.xlu1 %v279_v54 }
 0x2b6   :  { %v281_v55 = vpop.xlane.xlu1 %280 }
 0x2b7   :  { %v284_v56 = vsub.f32 %v278_v52, %v281_v55 }
 0x2b9   :  { %v286_v57 = vmul.f32 1.442695, %v284_v56 }
 0x2ba   :  { %v283_v58 = vpop.xlane.xlu1 %282 }
 0x2bb   :  { %432 = vpow2.f32 %v286_v57  ;;  %v285_v59 = vsub.f32 %v279_v54, %v283_v58  ;;  %v366_v58 = vld [vmem:[%s608_s6 + $0x8] sm:$0xff] }
 0x2bd   :  { %v288_v60 = vmul.f32 1.442695, %v285_v59 }
 0x2bf   :  { %434 = vpow2.f32 %v288_v60 }
 0x2c8   :  { %v433_v61 = vpop.eup %432 }
 0x2c9   :  { %290 = vadd.xlane.f32.xlu0 %v433_v61 }
 0x2cc   :  { %v435_v62 = vpop.eup %434 }
 0x2cd   :  { %292 = vadd.xlane.f32.xlu1 %v435_v62 }
 0x352   :  { %v291_v63 = vpop.xlane.xlu0 %290 }
 0x353   :  { %436 = vrcp.f32 %v291_v63 }
 0x356   :  { %v293_v0 = vpop.xlane.xlu1 %292 }
 0x357   :  { %438 = vrcp.f32 %v293_v0 }
 0x358   :  { %440 = vpow2.f32 %v400_v16 }
 0x359   :  { %442 = vpow2.f32 %v399_v17 }
 0x360   :  { %v437_v1 = vpop.eup %436 }
 0x361   :  { %v295_v2 = vmul.f32 %v437_v1, %v433_v61 }
 0x363   :  { %v299_v3 = vsel %vm298_vm6, %v295_v2, -1.0 }
 0x364   :  { %v439_v4 = vpop.eup %438  ;;  %301 = vmax.xlane.f32.xlu0 %v299_v3 }
 0x365   :  { %v297_v5 = vmul.f32 %v439_v4, %v435_v62  ;;  %v441_v23 = vpop.eup %440 }
 0x366   :  { %v443_v24 = vpop.eup %442  ;;  %v346_v27 = vadd.f32 1.0, %v441_v23 }
 0x367   :  { %v300_v6 = vsel %vm298_vm6, %v297_v5, -1.0  ;;  %v345_v29 = vadd.f32 1.0, %v443_v24 }
 0x368   :  { %303 = vmax.xlane.f32.xlu1 %v300_v6  ;;  %444 = vrcp.f32 %v346_v27 }
 0x369   :  { %446 = vrcp.f32 %v345_v29 }
 0x375   :  { %v445_v30 = vpop.eup %444 }
 0x376   :  { %v447_v31 = vpop.eup %446  ;;  %v375_v2 = vsel %vm565_vm1, %v445_v30, %v532_v51 }
 0x377   :  { %v374_v57 = vsel %vm565_vm1, %v447_v31, %v534_v53 }
 0x3ed   :  { %v537_v7 = vpop.xlane.xlu0 %301 }
 0x3ee   :  { %vm305_vm7 = vcmp.eq.f32.partialorder %v299_v3, %v537_v7 }
 0x3ef   :  { %v307_v8 = vsel %vm305_vm7, %v507_v13, 4 }
 0x3f0   :  { %v310_v9 = vshra.s32 %v307_v8, 16  ;;  %v309_v18 = vand.u32 65535, %v307_v8 }
 0x3f1   :  { %v541_v10 = vpop.xlane.xlu1 %303 }
 0x3f2   :  { %vm306_vm8 = vcmp.eq.f32.partialorder %v300_v6, %v541_v10  ;;  %v312_v11 = vcvt.s32.f32 %v310_v9  ;;  %v311_v20 = vcvt.s32.f32 %v309_v18 }
 0x3f3   :  { %v308_v12 = vsel %vm306_vm8, %v507_v13, 4 }
 0x3f4   :  { %313 = vmin.xlane.f32.xlu0 %v312_v11  ;;  %v324_v14 = vshra.s32 %v308_v12, 16  ;;  %v323_v21 = vand.u32 65535, %v308_v12 }
 0x3f6   :  { %v326_v15 = vcvt.s32.f32 %v324_v14  ;;  %v325_v26 = vcvt.s32.f32 %v323_v21 }
 0x3f8   :  { %327 = vmin.xlane.f32.xlu1 %v326_v15 }
 0x47d   :  { %v314_v19 = vpop.xlane.xlu0 %313 }
 0x47e   :  { %vm315_vm9 = vcmp.eq.f32.partialorder %v312_v11, %v314_v19  ;;  %v320_v33 = vcvt.f32.s32 %v314_v19 }
 0x47f   :  { %v316_v22 = vsel %vm315_vm9, %v311_v20, inf }
 0x480   :  { %317 = vmin.xlane.f32.xlu0 %v316_v22  ;;  %v321_v39 = vshll.u32 %v320_v33, 16 }
 0x481   :  { %v328_v25 = vpop.xlane.xlu1 %327 }
 0x482   :  { %vm329_vm10 = vcmp.eq.f32.partialorder %v326_v15, %v328_v25  ;;  %v334_v41 = vcvt.f32.s32 %v328_v25 }
 0x483   :  { %v330_v28 = vsel %vm329_vm10, %v325_v26, inf }
 0x484   :  { %331 = vmin.xlane.f32.xlu1 %v330_v28  ;;  %v335_v54 = vshll.u32 %v334_v41, 16 }
 0x495   :  { %353 = vrot.lane.b32.xlu1 %v445_v30, %s451_s2 }
 0x496   :  { %351 = vrot.lane.b32.xlu0 %v447_v31, %s451_s2 }
 0x509   :  { %v318_v32 = vpop.xlane.xlu0 %317 }
 0x50a   :  { %v319_v36 = vcvt.f32.s32 %v318_v32 }
 0x50c   :  { %v322_v45 = vadd.s32 %v321_v39, %v319_v36 }
 0x50d   :  { %v352_v37 = vpop.permute.xlu0 %351  ;;  %v332_v38 = vpop.xlane.xlu1 %331 }
 0x50e   :  { %v358_v40 = vsel %vm355_vm11, %v352_v37, %v447_v31  ;;  %v356_v44 = vsel %vm355_vm11, %v447_v31, %v352_v37  ;;  %v333_v47 = vcvt.f32.s32 %v332_v38  ;;  %v337_v60 = vcvt.s32.f32 %v322_v45 }
 0x50f   :  { %v361_v42 = vmul.f32 %v360_v35, %v358_v40 }
 0x510   :  { %v336_v62 = vadd.s32 %v335_v54, %v333_v47 }
 0x511   :  { %v363_v46 = vadd.f32 %v361_v42, %v356_v44  ;;  %v354_v48 = vpop.permute.xlu1 %353 }
 0x512   :  { %v359_v50 = vsel %vm355_vm11, %v354_v48, %v445_v30  ;;  %v357_v59 = vsel %vm355_vm11, %v445_v30, %v354_v48  ;;  %v338_v3 = vcvt.s32.f32 %v336_v62 }
 0x513   :  { %v367_v55 = vmul.f32 %v365_v43, %v363_v46  ;;  %v362_v56 = vmul.f32 %v360_v35, %v359_v50 }
 0x515   :  { %v379_v61 = vsel %vm559_vm0, %v367_v55, %v374_v57  ;;  %v364_v63 = vadd.f32 %v362_v56, %v357_v59 }
 0x516   :  { %v382_v0 = vsel %vm381_vm2, %v537_v7, %v379_v61 }
 0x517   :  { %v385_v53 = vsel %vm384_vm3, %v337_v60, %v382_v0  ;;  %v368_v1 = vmul.f32 %v366_v58, %v364_v63 }
 0x518   :  { %387 = vst [vmem:[%s609_s7] sm:$0xff] %v385_v53 }
 0x519   :  { %v380_v4 = vsel %vm559_vm0, %v368_v1, %v375_v2 }
 0x51a   :  { %v383_v5 = vsel %vm381_vm2, %v541_v10, %v380_v4 }
 0x51b   :  { %v386_v6 = vsel %vm384_vm3, %v338_v3, %v383_v5 }
 0x51c   :  { %388 = vst [vmem:[%s609_s7 + $0x8] sm:$0xff] %v386_v6 }

</bundles_post_ra>
